<compile_context>
chip_gen: v7x
topology: tpu7x:2x2x1
jax: 0.10.0
libtpu: 0.0.40
codegen_flags: <defaults>
</compile_context>

<pallas_src>
import functools

import jax
import jax.numpy as jnp
from jax.experimental import pallas as pl
from jax.experimental.pallas import tpu as pltpu


def _kv_gather_soft_kernel(rw_ref, kv_ref, out_ref, *, topk, d):
    """rw_ref: (TN, topk); kv_ref: (TN, d); out_ref: (TN, topk*d) -- all VMEM."""
    kv = kv_ref[...]                                   # (TN, d)
    for k in range(topk):                              # topk small & static -> unrolled
        w = rw_ref[:, k:k + 1]                         # (TN, 1), broadcast along lanes
        out_ref[:, k * d:(k + 1) * d] = (w * kv).astype(out_ref.dtype)


def _kv_gather_none_kernel(kv_ref, out_ref, *, topk, d):
    kv = kv_ref[...]                                   # (TN, d)
    for k in range(topk):
        out_ref[:, k * d:(k + 1) * d] = kv


def _vmem_budget_bytes():
    """Per-generation VMEM working-set budget (v7x has 64 MiB/TC, v5e/v6e 128 MiB)."""
    try:
        cap = pltpu.get_tpu_info().vmem_capacity_bytes
    except Exception:                                  # non-TPU / older jax: be conservative
        cap = 64 << 20
    budget = min(40 << 20, int(cap * 0.6))             # double-buffered kv+out target
    limit = min(int(cap * 0.75), budget + (16 << 20))  # vmem_limit_bytes (headroom)
    return budget, limit


def _choose_block_rows(n_rows, topk, d, itemsize, budget_bytes):
    """Largest multiple-of-8 row block whose double-buffered kv+out+rw footprint
    fits the budget, while always yielding >= 2 grid blocks (pipeline overlap and
    v7x dual-core sharding), preferring an even block count.
    TODO(synk): for very large topk*D a 2-D (row_block, k) grid would let TN grow.
    """
    per_row = 2 * (1 + topk) * d * itemsize + 2 * topk * itemsize   # 2x = double-buffering
    tn = budget_bytes // max(per_row, 1)
    tn = max(8, min(8192, (tn // 8) * 8))
    if n_rows > 8:
        # Never emit a single-block grid.
        tn = min(tn, max(8, (pl.cdiv(n_rows, 2) // 8) * 8))
        n_blocks = pl.cdiv(n_rows, tn)
        if n_blocks > 1 and n_blocks % 2 == 1:
            # Nudge toward an even block count so v7x's two TensorCores balance.
            tn_even = max(8, (pl.cdiv(n_rows, n_blocks + 1) // 8) * 8)
            if pl.cdiv(n_rows, tn_even) % 2 == 0:
                tn = tn_even
    return tn


def kv_gather(r_idx, r_weight, kv, mul_weight='soft'):
    """Pallas implementation of KVGather.forward.

    r_idx:    (B, heads, region, topk) int32   (unused, exactly as in the reference)
    r_weight: (B, heads, region, topk) float
    kv:       (B, heads, region, w2, c)
    returns:  (B, heads, region, topk, w2, c)
    """
    assert mul_weight in ('none', 'soft', 'hard')
    if mul_weight == 'hard':
        # Reference raises NotImplementedError for hard routing; mirror it.
        raise NotImplementedError('differentiable hard routing TBA')

    B, H, R, W2, C = kv.shape
    K = r_idx.shape[-1]
    N = B * H * R
    D = W2 * C
    itemsize = kv.dtype.itemsize

    # Lane-dense Pallas path needs 128-aligned strips; otherwise (and whenever a
    # lazy broadcast is acceptable downstream) XLA's fused broadcast is optimal.
    if D % 128 != 0:
        out = jnp.broadcast_to(kv[:, :, :, None, :, :], (B, H, R, K, W2, C))
        if mul_weight == 'soft':
            out = r_weight[..., None, None].astype(kv.dtype) * out
        return out

    kv_flat = kv.reshape(N, D)
    budget, vmem_limit = _vmem_budget_bytes()
    TN = _choose_block_rows(N, K, D, itemsize, budget)
    n_blocks = pl.cdiv(N, TN)          # ragged trailing block: OOB output rows masked

    compiler_params = pltpu.CompilerParams(
        dimension_semantics=("parallel",),             # shard row-blocks across cores
        vmem_limit_bytes=vmem_limit,
    )
    out_shape = jax.ShapeDtypeStruct((N, K * D), kv.dtype)
    out_spec = pl.BlockSpec((TN, K * D), lambda i: (i, 0))   # lane-dense output slab
    kv_spec = pl.BlockSpec((TN, D), lambda i: (i, 0))

    if mul_weight == 'soft':
        # Multiply in kv's dtype (matches the reference for same-dtype inputs).
        rw_flat = r_weight.reshape(N, K).astype(kv.dtype)
        cost = pl.CostEstimate(
            flops=N * K * D, transcendentals=0,
            bytes_accessed=(N * D + N * K * D + N * K) * itemsize)
        kernel = functools.partial(_kv_gather_soft_kernel, topk=K, d=D)
        out_flat = pl.pallas_call(
            kernel,
            out_shape=out_shape,
            grid=(n_blocks,),
            in_specs=[pl.BlockSpec((TN, K), lambda i: (i, 0)), kv_spec],
            out_specs=out_spec,
            compiler_params=compiler_params,
            cost_estimate=cost,
        )(rw_flat, kv_flat)
    else:  # 'none' -- materialised broadcast; r_weight never touched.
        cost = pl.CostEstimate(
            flops=0, transcendentals=0,
            bytes_accessed=(N * D + N * K * D) * itemsize)
        kernel = functools.partial(_kv_gather_none_kernel, topk=K, d=D)
        out_flat = pl.pallas_call(
            kernel,
            out_shape=out_shape,
            grid=(n_blocks,),
            in_specs=[kv_spec],
            out_specs=out_spec,
            compiler_params=compiler_params,
            cost_estimate=cost,
        )(kv_flat)

    return out_flat.reshape(B, H, R, K, W2, C)


def _reference(r_idx, r_weight, kv, mul_weight):
    """Plain-JAX replica of the (degenerate) PyTorch gather for verification."""
    B, H, R, W2, C = kv.shape
    K = r_idx.shape[-1]
    out = jnp.broadcast_to(kv[:, :, :, None, :, :], (B, H, R, K, W2, C))
    if mul_weight == 'soft':
        out = r_weight[..., None, None].astype(kv.dtype) * out
    return out


if __name__ == "__main__":
    key = jax.random.PRNGKey(0)

    ok = True
    # (B, H, R, W2, C, K): the second case has N % TN != 0, exercising the ragged
    # trailing block (no pad / slice HBM round-trips anymore).
    for (B, H, R, W2, C, K) in ((2, 2, 8, 16, 32, 4), (2, 2, 9, 16, 32, 4)):
        k1, k2, k3 = jax.random.split(jax.random.fold_in(key, R), 3)
        kv = jax.random.normal(k1, (B, H, R, W2, C), dtype=jnp.float32)
        r_weight = jax.nn.softmax(
            jax.random.normal(k2, (B, H, R, K), dtype=jnp.float32), axis=-1)
        r_idx = jax.random.randint(k3, (B, H, R, K), 0, R, dtype=jnp.int32)

        for mode in ('soft', 'none'):
            out = kv_gather(r_idx, r_weight, kv, mul_weight=mode)
            out = jax.block_until_ready(out)
            ref = _reference(r_idx, r_weight, kv, mode)
            assert out.shape == (B, H, R, K, W2, C), out.shape
            ok &= bool(jnp.allclose(out, ref, atol=1e-6, rtol=1e-6))

    print("KERNEL_OK" if ok else "KERNEL_MISMATCH")
</pallas_src>

<mosaic_0001>
module attributes {stable_mosaic.version = 11 : i64} {
  func.func @_kv_gather_soft_kernel(%arg0: i32, %arg1: memref<16x4xf32, #tpu.memory_space<vmem>>, %arg2: memref<16x512xf32, #tpu.memory_space<vmem>>, %arg3: memref<16x2048xf32, #tpu.memory_space<vmem>>) attributes {dimension_semantics = [#tpu.dimension_semantics<parallel>], iteration_bounds = array<i64: 2>, scalar_prefetch = 0 : i64, scratch_operands = 0 : i64, tpu.core_type = #tpu.core_type<tc>, window_params = [{transform_indices = @transform_0, window_bounds = array<i64: 16, 4>}, {transform_indices = @transform_1, window_bounds = array<i64: 16, 512>}, {transform_indices = @transform_2, window_bounds = array<i64: 16, 2048>}]} {
    %c0 = arith.constant 0 : index
    %c0_0 = arith.constant 0 : index
    %0 = vector.load %arg2[%c0, %c0_0] : memref<16x512xf32, #tpu.memory_space<vmem>>, vector<16x512xf32>
    %c0_1 = arith.constant 0 : index
    %c0_2 = arith.constant 0 : index
    %1 = vector.load %arg1[%c0_1, %c0_2] : memref<16x4xf32, #tpu.memory_space<vmem>>, vector<16x1xf32>
    %2 = vector.broadcast %1 : vector<16x1xf32> to vector<16x512xf32>
    %3 = arith.mulf %2, %0 : vector<16x512xf32>
    %c0_3 = arith.constant 0 : index
    %c0_4 = arith.constant 0 : index
    %4 = vector.load %arg3[%c0_3, %c0_4] : memref<16x2048xf32, #tpu.memory_space<vmem>>, vector<16x512xf32>
    tpu.vector_store %arg3[%c0_3, %c0_4], %3 {strides = array<i32>} : memref<16x2048xf32, #tpu.memory_space<vmem>>, vector<16x512xf32>,
    %c0_5 = arith.constant 0 : index
    %c1 = arith.constant 1 : index
    %5 = vector.load %arg1[%c0_5, %c1] : memref<16x4xf32, #tpu.memory_space<vmem>>, vector<16x1xf32>
    %6 = vector.broadcast %5 : vector<16x1xf32> to vector<16x512xf32>
    %7 = arith.mulf %6, %0 : vector<16x512xf32>
    %c0_6 = arith.constant 0 : index
    %c512 = arith.constant 512 : index
    %8 = vector.load %arg3[%c0_6, %c512] : memref<16x2048xf32, #tpu.memory_space<vmem>>, vector<16x512xf32>
    tpu.vector_store %arg3[%c0_6, %c512], %7 {strides = array<i32>} : memref<16x2048xf32, #tpu.memory_space<vmem>>, vector<16x512xf32>,
    %c0_7 = arith.constant 0 : index
    %c2 = arith.constant 2 : index
    %9 = vector.load %arg1[%c0_7, %c2] : memref<16x4xf32, #tpu.memory_space<vmem>>, vector<16x1xf32>
    %10 = vector.broadcast %9 : vector<16x1xf32> to vector<16x512xf32>
    %11 = arith.mulf %10, %0 : vector<16x512xf32>
    %c0_8 = arith.constant 0 : index
    %c1024 = arith.constant 1024 : index
    %12 = vector.load %arg3[%c0_8, %c1024] : memref<16x2048xf32, #tpu.memory_space<vmem>>, vector<16x512xf32>
    tpu.vector_store %arg3[%c0_8, %c1024], %11 {strides = array<i32>} : memref<16x2048xf32, #tpu.memory_space<vmem>>, vector<16x512xf32>,
    %c0_9 = arith.constant 0 : index
    %c3 = arith.constant 3 : index
    %13 = vector.load %arg1[%c0_9, %c3] : memref<16x4xf32, #tpu.memory_space<vmem>>, vector<16x1xf32>
    %14 = vector.broadcast %13 : vector<16x1xf32> to vector<16x512xf32>
    %15 = arith.mulf %14, %0 : vector<16x512xf32>
    %c0_10 = arith.constant 0 : index
    %c1536 = arith.constant 1536 : index
    %16 = vector.load %arg3[%c0_10, %c1536] : memref<16x2048xf32, #tpu.memory_space<vmem>>, vector<16x512xf32>
    tpu.vector_store %arg3[%c0_10, %c1536], %15 {strides = array<i32>} : memref<16x2048xf32, #tpu.memory_space<vmem>>, vector<16x512xf32>,
    return
  }
  func.func @transform_0(%arg0: i32) -> (i32, i32) {
    %c0_i32 = arith.constant 0 : i32
    %c0_i32_0 = arith.constant 0 : i32
    return %arg0, %c0_i32 : i32, i32
  }
  func.func @transform_1(%arg0: i32) -> (i32, i32) {
    %c0_i32 = arith.constant 0 : i32
    %c0_i32_0 = arith.constant 0 : i32
    return %arg0, %c0_i32 : i32, i32
  }
  func.func @transform_2(%arg0: i32) -> (i32, i32) {
    %c0_i32 = arith.constant 0 : i32
    %c0_i32_0 = arith.constant 0 : i32
    return %arg0, %c0_i32 : i32, i32
  }
}

</mosaic_0001>

<bundles_post_ra>
// kernel: tpu_custom_call.1
= control target key start
LH: loop header
LB: loop body
LE: loop exit
PB: predicated region body
PF: predicated region fallthrough
CT: control target
= control target key end

     0   :  { %7 = vsyncpa [#allocation3], 0  ;;  %s854_s0 = inlined_call_operand.vmem [shape: f32[32,4], index: 0, kind: input, shape index: {}]   ;;  %s855_s1 = inlined_call_operand.hbm [shape: f32[32,512], index: 1, kind: input, shape index: {}]   ;;  %s856_s2 = inlined_call_operand.hbm [shape: f32[32,2048], index: 2, kind: output, shape index: {}]  }
   0x1   :  { %9 = vsyncpa [#allocation3 + $0x1], 0 }
   0x2   :  { %10 = vsyncpa [#allocation4], 0 }
   0x3   :  { %12 = vsyncpa [#allocation4 + $0x1], 0  ;;  %s612_s9 = smov 0   ;;  %s614_s10 = smov 0  }
   0x4   :  { %s616_s11 = smov 0   ;;  %s618_s12 = smov 0  }
   0x5 LB: > { %s633_s13 = sadd.s32 4294967295, %s585_s12   ;;  %s407_s14 = sadd.s32 4294967294, %s585_s12   ;;  %s585_s12 = sphi %s618_s12, %s869_s12   ;;  %s581_s11 = sphi %s616_s11, %s868_s11   ;;  %s577_s10 = sphi %s614_s10, %s867_s10   ;;  %s573_s9 = sphi %s612_s9, %s866_s9  }
   0x6   : > { %s637_s15 = sadd.s32 1, %s585_s12   ;;  %s51_s16 = sadd.s32 1, %s581_s11 }
   0x7   : > { %s48_s17 = ssub.s32 %s585_s12, %s637_s15  ;;  %p58_p0 = scmp.ne.s32.totalorder %s581_s11, %s577_s10 }
   0x8   : > { %p49_p1 = scmp.eq.s32.totalorder %s48_s17, 0  ;;  %p59_p2 = scmp.eq.s32.totalorder %s585_s12, 0 }
   0x9   : > { %p64_p3 = scmp.ne.s32.totalorder %s577_s10, %s573_s9  ;;  %p65_p4 = scmp.eq.s32.totalorder %s633_s13, 0 }
   0xa   : > { %s649_s18 = scalar_select %p49_p1, %s581_s11, %s51_s16  }
   0xb   : > { %p651_p5 = por %p59_p2, %p58_p0  ;;  %p655_p6 = por %p65_p4, %p64_p3 }
   0xc   : > { %p88_p7 = scmp.eq.s32.totalorder %s633_s13, 1  ;;  %p94_p8 = scmp.eq.s32.totalorder %s407_s14, 1 }
   0xd   : > { %p441_p10 = scmp.lt.s32.totalorder %s585_s12, 2  ;;  %s123_s23 = sand.u32 1, %s581_s11  }
   0xe   : > { %p662_p11 = por %p88_p7, %p58_p0  ;;  %p666_p12 = por %p94_p8, %p64_p3 }
   0xf   : > { %s426_s24 = sshll.u32 %s585_s12, 10  ;;  %s410_s25 = sshll.u32 %s123_s23, 6 }
  0x10   : > { %s860_s21 = scalar_select %p662_p11, 1, 0 }
  0x11   : > { %s861_s22 = scalar_select %p666_p12, 1, 0 }
  0x12   : > { %s675_s28 = scalar_lea.hbm %s855_s1, %s426_s24  ;;  %s127_s29 = scalar_lea.vmem [#allocation2], %s410_s25 }
  0x13   : > { %s135_s30 = sshll.u32 %s127_s29, 4  ;;  %p679_p13 = pnand %p441_p10, %p651_p5  ;;  %s683_s30 = int_to_ptr.vmem [resolvable:$true] %s135_s30 }
  0x14   : > { %s685_s4 = scalar_lea.sflag [#allocation3], %s123_s23  ;;  %s489_s5 = scalar_lea.hbm %s675_s28, 1024 }
  0x15   : > { %p490_p0 = scmp.ne.s32.totalorder %s675_s28, %s489_s5  ;;  %p491_p1 = pneg %p679_p13 }
  0x16   : > { %s494_s8 = scalar_lea.hbm %s855_s1, 2048  ;;  %p495_p4 = scmp.lt.u32.totalorder %s675_s28, %s855_s1 }
  0x17   : > { %p492_p2 = pnand %p491_p1, %p490_p0  ;;  %p496_p5 = scmp.lt.u32.totalorder %s494_s8, %s489_s5 }
  0x18   : > { %p498_p8 = scmp.lt.u32.totalorder %s489_s5, %s675_s28 }
  0x19   : > { %p493_p3 = pneg %p492_p2  ;;  %p497_p7 = por %p496_p5, %p495_p4 }
  0x1b   : > { %p499_p10 = por %p498_p8, %p497_p7 }
  0x1d   : > { %p500_p9 = pnand %p499_p10, %p493_p3 }
  0x1f   : > { %503 = shalt.err (!%p500_p9)
}
  0x20   : > { %s504_s17 = scalar_lea.vmem %s683_s30, 1024  ;;  %s587_s19 = smov [#allocation2]  }
  0x21   : > { %p505_p0 = scmp.ne.s32.totalorder %s683_s30, %s504_s17  ;;  %s509_s23 = sshll.u32 %s587_s19, 4  ;;  %s510_s23 = int_to_ptr.vmem [resolvable:$false] %s509_s23 }
  0x22   : > { %s511_s24 = scalar_lea.vmem %s510_s23, 2048  ;;  %p512_p11 = scmp.lt.s32.totalorder %s683_s30, %s510_s23 }
  0x23   : > { %p507_p2 = pnand %p505_p0, %p491_p1  ;;  %p513_p4 = scmp.lt.s32.totalorder %s511_s24, %s504_s17 }
  0x25   : > { %p508_p12 = pneg %p507_p2  ;;  %p514_p5 = por %p513_p4, %p512_p11 }
  0x27   : > { %p515_p7 = pnand %p514_p5, %p508_p12 }
  0x29   : > { %518 = shalt.err (!%p515_p7)
}
  0x2a   : > { %s588_s25 = smov 512   ;;  %s589_s26 = smov 32  }
  0x2b   : > { %436 = dma.hbm_to_vmem [thread:$0]  (!%p679_p13), %s675_s28, 1024, %s683_s30, %s685_s4, %s588_s25, %s588_s25, %s589_s26  }
  0x2c   : > { %p414_p9 = scmp.ge.s32.totalorder %s585_s12, 1  ;;  %p143_p1 = scmp.lt.s32.totalorder %s585_s12, 3 }
  0x2e   : > { %p144_p3 = pnand %p414_p9, %p143_p1 }
  0x2f   : > { %s716_s27 = sand.u32 (!%p144_p3), 1, %s577_s10  }
  0x30   : > { %147 = sbr.rel (%p144_p3) target bundleno = 225 (0xe1), region = 28  ;;  %s415_s29 = sshll.u32 (!%p144_p3), %s716_s27, 6 }
  0x31   : > { %s150_s5 = scalar_lea.sflag (!%p144_p3), [#allocation3], %s716_s27  ;;  %s720_s6 = scalar_lea.vmem (!%p144_p3), [#allocation2], %s415_s29 }
  0x37   : > { %564 = dma.done.wait (%p655_p6), %s150_s5, 1024  }
  0x38   : > { %566 = vsyncadd (%p655_p6), %s150_s5, 4294966272  ;;  %s417_s28 = sshll.u32 %s633_s13, 1  ;;  %v590_v0 = vmov 1   ;;  %v591_v1 = vmov 0   ;;  %v592_v4 = vmov 2   ;;  %v593_v5 = vmov 3  }
  0x39   : > { %484 = vset.pattern.permute.xlu1 %v590_v0  ;;  %483 = vset.pattern.permute.xlu0 %v591_v1  ;;  %p180_p11 = scmp.lt.s32.totalorder %s417_s28, 3  ;;  %s416_s20 = sshll.u32 %s716_s27, 8  ;;  %v732_v6 = vld [vmem:[%s720_s6] sm:$0xff]  ;;  %v735_v7 = vld [vmem:[%s720_s6 + $0x8] sm:$0xff]  ;;  %v738_v8 = vld [vmem:[%s720_s6 + $0x10] sm:$0xff] }
  0x3a   : > { %v741_v9 = vld [vmem:[%s720_s6 + $0x18] sm:$0xff]  ;;  %v748_v16 = vld [vmem:[%s720_s6 + $0x20] sm:$0xff]  ;;  %v192_v21 = vld [vmem:[%s720_s6 + $0x28] sm:$0xff]  ;;  %s757_s8 = scalar_lea.vmem [#allocation5], %s416_s20  ;;  %s428_s14 = sshll.u32 %s633_s13, 12 }
  0x3b   : > { %s871_s28 = smov (!%p180_p11, %s417_s28), 3  ;;  %v193_v22 = vld [vmem:[%s720_s6 + $0x30] sm:$0xff]  ;;  %v194_v23 = vld [vmem:[%s720_s6 + $0x38] sm:$0xff]  ;;  %s322_s16 = sshll.u32 %s757_s8, 4  ;;  %s801_s16 = int_to_ptr.vmem [resolvable:$true] %s322_s16 }
  0x3c   : > { %s418_s30 = sshll.u32 %s871_s28, 3  ;;  %s799_s19 = scalar_lea.hbm %s856_s2, %s428_s14 }
  0x3d   : > { %s183_s7 = scalar_lea.vmem %s854_s0, %s418_s30  ;;  %s308_s23 = scalar_lea.sflag [#allocation4], %s716_s27 }
  0x3e   : > { %v223_v2 = vld [vmem:[%s183_s7] sm:$0xff]  ;;  %v224_v3 = vld [vmem:[%s183_s7 + $0x8] sm:$0xff]  ;;  %s519_s24 = scalar_lea.vmem %s801_s16, 4096  ;;  %p863_p12 = scmp.ne.s32.totalorder %s860_s21, 0 }
  0x3f   : > { %227 = vperm.xlu1 %484, %v223_v2   ;;  %199 = vperm.xlu0 %483, %v223_v2   ;;  %p520_p6 = scmp.ne.s32.totalorder %s801_s16, %s519_s24  ;;  %s594_s25 = smov [#allocation5]  }
  0x40   : > { %s523_s26 = sshll.u32 %s594_s25, 4  ;;  %s524_s26 = int_to_ptr.vmem [resolvable:$false] %s523_s26 }
  0x41   : > { %p521_p13 = pnand %p520_p6, %p863_p12  ;;  %s525_s29 = scalar_lea.vmem %s524_s26, 8192 }
  0x42   : > { %p526_p10 = scmp.lt.s32.totalorder %s801_s16, %s524_s26  ;;  %p527_p0 = scmp.lt.s32.totalorder %s525_s29, %s519_s24 }
  0x43   : > { %232 = vperm.xlu1 %484, %v224_v3   ;;  %204 = vperm.xlu0 %483, %v224_v3   ;;  %p522_p8 = pneg %p521_p13 }
  0x44   : > { %p528_p2 = por %p527_p0, %p526_p10 }
  0x46   : > { %p529_p4 = pnand %p528_p2, %p522_p8 }
  0x47   : > { %486 = vset.pattern.permute.xlu1 %v592_v4  ;;  %485 = vset.pattern.permute.xlu0 %v592_v4 }
  0x48   : > { %260 = vperm.xlu1 %486, %v224_v3   ;;  %255 = vperm.xlu0 %485, %v223_v2  }
  0x4c   : > { %487 = vset.pattern.permute.xlu1 %v593_v5  ;;  %488 = vset.pattern.permute.xlu0 %v593_v5 }
  0x4d   : > { %283 = vperm.xlu1 %487, %v223_v2   ;;  %288 = vperm.xlu0 %488, %v224_v3  }
  0xbe   : > { %v228_v10 = vpop.permute.xlu1 %227  ;;  %v200_v11 = vpop.permute.xlu0 %199 }
  0xbf   : > { %v235_v12 = vmul.f32 %v228_v10, %v732_v6  ;;  %v236_v13 = vmul.f32 %v228_v10, %v735_v7  ;;  %v237_v14 = vmul.f32 %v228_v10, %v738_v8  ;;  %v238_v15 = vmul.f32 %v228_v10, %v741_v9 }
  0xc0   : > { %v207_v17 = vmul.f32 %v200_v11, %v732_v6  ;;  %v208_v18 = vmul.f32 %v200_v11, %v735_v7  ;;  %v209_v19 = vmul.f32 %v200_v11, %v738_v8  ;;  %v210_v20 = vmul.f32 %v200_v11, %v741_v9 }
  0xc1   : > { %243 = vst [vmem:[%s757_s8 + $0x20] sm:$0xff] %v235_v12  ;;  %244 = vst [vmem:[%s757_s8 + $0x28] sm:$0xff] %v236_v13 }
  0xc2   : > { %245 = vst [vmem:[%s757_s8 + $0x30] sm:$0xff] %v237_v14  ;;  %246 = vst [vmem:[%s757_s8 + $0x38] sm:$0xff] %v238_v15  ;;  %v233_v24 = vpop.permute.xlu1 %232  ;;  %v205_v25 = vpop.permute.xlu0 %204 }
  0xc3   : > { %215 = vst [vmem:[%s757_s8] sm:$0xff] %v207_v17  ;;  %216 = vst [vmem:[%s757_s8 + $0x8] sm:$0xff] %v208_v18  ;;  %v239_v26 = vmul.f32 %v233_v24, %v748_v16  ;;  %v240_v27 = vmul.f32 %v233_v24, %v192_v21  ;;  %v241_v28 = vmul.f32 %v233_v24, %v193_v22 }
  0xc4   : > { %217 = vst [vmem:[%s757_s8 + $0x10] sm:$0xff] %v209_v19  ;;  %218 = vst [vmem:[%s757_s8 + $0x18] sm:$0xff] %v210_v20  ;;  %v242_v29 = vmul.f32 %v233_v24, %v194_v23  ;;  %v211_v30 = vmul.f32 %v205_v25, %v748_v16  ;;  %v212_v31 = vmul.f32 %v205_v25, %v192_v21 }
  0xc5   : > { %v213_v32 = vmul.f32 %v205_v25, %v193_v22  ;;  %v214_v33 = vmul.f32 %v205_v25, %v194_v23  ;;  %247 = vst [vmem:[%s757_s8 + $0xa0] sm:$0xff] %v239_v26  ;;  %248 = vst [vmem:[%s757_s8 + $0xa8] sm:$0xff] %v240_v27 }
  0xc6   : > { %249 = vst [vmem:[%s757_s8 + $0xb0] sm:$0xff] %v241_v28  ;;  %250 = vst [vmem:[%s757_s8 + $0xb8] sm:$0xff] %v242_v29 }
  0xc7   : > { %219 = vst [vmem:[%s757_s8 + $0x80] sm:$0xff] %v211_v30  ;;  %220 = vst [vmem:[%s757_s8 + $0x88] sm:$0xff] %v212_v31  ;;  %v261_v34 = vpop.permute.xlu1 %260  ;;  %v256_v35 = vpop.permute.xlu0 %255 }
  0xc8   : > { %221 = vst [vmem:[%s757_s8 + $0x90] sm:$0xff] %v213_v32  ;;  %222 = vst [vmem:[%s757_s8 + $0x98] sm:$0xff] %v214_v33  ;;  %v267_v36 = vmul.f32 %v261_v34, %v748_v16  ;;  %v268_v37 = vmul.f32 %v261_v34, %v192_v21  ;;  %v269_v38 = vmul.f32 %v261_v34, %v193_v22 }
  0xc9   : > { %v270_v39 = vmul.f32 %v261_v34, %v194_v23  ;;  %v263_v40 = vmul.f32 %v256_v35, %v732_v6  ;;  %v264_v41 = vmul.f32 %v256_v35, %v735_v7  ;;  %v265_v42 = vmul.f32 %v256_v35, %v738_v8 }
  0xca   : > { %v266_v43 = vmul.f32 %v256_v35, %v741_v9  ;;  %275 = vst [vmem:[%s757_s8 + $0xc0] sm:$0xff] %v267_v36  ;;  %276 = vst [vmem:[%s757_s8 + $0xc8] sm:$0xff] %v268_v37 }
  0xcb   : > { %277 = vst [vmem:[%s757_s8 + $0xd0] sm:$0xff] %v269_v38  ;;  %278 = vst [vmem:[%s757_s8 + $0xd8] sm:$0xff] %v270_v39 }
  0xcc   : > { %271 = vst [vmem:[%s757_s8 + $0x40] sm:$0xff] %v263_v40  ;;  %272 = vst [vmem:[%s757_s8 + $0x48] sm:$0xff] %v264_v41  ;;  %v284_v44 = vpop.permute.xlu1 %283  ;;  %v289_v45 = vpop.permute.xlu0 %288 }
  0xcd   : > { %273 = vst [vmem:[%s757_s8 + $0x50] sm:$0xff] %v265_v42  ;;  %274 = vst [vmem:[%s757_s8 + $0x58] sm:$0xff] %v266_v43  ;;  %v291_v46 = vmul.f32 %v284_v44, %v732_v6  ;;  %v292_v47 = vmul.f32 %v284_v44, %v735_v7  ;;  %v293_v48 = vmul.f32 %v284_v44, %v738_v8 }
  0xce   : > { %v294_v49 = vmul.f32 %v284_v44, %v741_v9  ;;  %v295_v50 = vmul.f32 %v289_v45, %v748_v16  ;;  %v296_v51 = vmul.f32 %v289_v45, %v192_v21  ;;  %v297_v52 = vmul.f32 %v289_v45, %v193_v22 }
  0xcf   : > { %v298_v53 = vmul.f32 %v289_v45, %v194_v23  ;;  %299 = vst [vmem:[%s757_s8 + $0x60] sm:$0xff] %v291_v46  ;;  %300 = vst [vmem:[%s757_s8 + $0x68] sm:$0xff] %v292_v47 }
  0xd0   : > { %301 = vst [vmem:[%s757_s8 + $0x70] sm:$0xff] %v293_v48  ;;  %302 = vst [vmem:[%s757_s8 + $0x78] sm:$0xff] %v294_v49 }
  0xd1   : > { %303 = vst [vmem:[%s757_s8 + $0xe0] sm:$0xff] %v295_v50  ;;  %304 = vst [vmem:[%s757_s8 + $0xe8] sm:$0xff] %v296_v51 }
  0xd2   : > { %305 = vst [vmem:[%s757_s8 + $0xf0] sm:$0xff] %v297_v52  ;;  %306 = vst [vmem:[%s757_s8 + $0xf8] sm:$0xff] %v298_v53 }
  0xd3   : > { %532 = shalt.err (!%p529_p4)
}
  0xd4   : > { %s533_s5 = scalar_lea.hbm %s799_s19, 4096  ;;  %s537_s30 = scalar_lea.hbm %s856_s2, 8192 }
  0xd5   : > { %p534_p5 = scmp.ne.s32.totalorder %s799_s19, %s533_s5  ;;  %p538_p1 = scmp.lt.u32.totalorder %s799_s19, %s856_s2 }
  0xd6   : > { %p539_p3 = scmp.lt.u32.totalorder %s537_s30, %s533_s5  ;;  %p541_p6 = scmp.lt.u32.totalorder %s533_s5, %s799_s19 }
  0xd7   : > { %p535_p7 = pnand %p534_p5, %p863_p12 }
  0xd8   : > { %p540_p11 = por %p539_p3, %p538_p1 }
  0xd9   : > { %p536_p9 = pneg %p535_p7 }
  0xda   : > { %p542_p13 = por %p541_p6, %p540_p11 }
  0xdc   : > { %p543_p8 = pnand %p542_p13, %p536_p9 }
  0xde   : > { %546 = shalt.err (!%p543_p8)
}
  0xdf   : > { %s595_s7 = smov 2048   ;;  %s596_s20 = smov 128  }
  0xe0   : > { %431 = dma.vmem_to_hbm [thread:$0]  (%p863_p12), %s801_s16, 4096, %s799_s19, %s308_s23, %s595_s7, %s595_s7, %s596_s20  }
  0xe1 PF: > { %s337_s8 = sand.u32 1, %s573_s9   ;;  %p864_p10 = scmp.ne.s32.totalorder %s861_s22, 0 }
  0xe2   : > { %p865_p0 = scmp.ge.s32.totalorder %s585_s12, 2  ;;  %s338_s14 = scalar_lea.sflag [#allocation4], %s337_s8 }
  0xe4   : > { %p438_p2 = pnand %p865_p0, %p864_p10 }
  0xe6   : > { %568 = dma.done.wait (!%p438_p2), %s338_s14, 4096  }
  0xe7   : > { %570 = vsyncadd (!%p438_p2), %s338_s14, 4294963200  ;;  %p15_p4 = scmp.ge.s32.totalorder %s637_s15, 4   ;;  %s866_s9 = smov %s577_s10 }
  0xe8   : > { %s867_s10 = smov %s581_s11  ;;  %s868_s11 = smov %s649_s18 }
  0xe9   : > { %s869_s12 = smov %s637_s15  ;;  %17 = sbr.rel (!%p15_p4) target bundleno = 5 (0x5), region = 76 }
  0xf0   :  { %343 = vsyncpa [#allocation3], 1 }
  0xf1   :  { %345 = vsyncpa [#allocation3 + $0x1], 1 }
  0xf2   :  { %346 = vsyncpa [#allocation4], 1 }
  0xf3   :  { %348 = vsyncpa [#allocation4 + $0x1], 1 }

</bundles_post_ra>
